<compile_context>
chip_gen: v7x
topology: tpu7x:2x2x1
jax: 0.10.0
libtpu: 0.0.40
codegen_flags: <defaults>
</compile_context>

<pallas_src>
import jax
import jax.numpy as jnp
from jax.experimental import pallas as pl
from jax.experimental.pallas import tpu as pltpu

_LANE = 128
_TILE_TARGET_BYTES = 4 * 1024 * 1024      # per operand, per pipeline buffer
_VMEM_LIMIT_BYTES = 48 * 1024 * 1024      # fits v7x (64 MiB phys) and v5e/v6e


def _elementwise_kernel(x_ref, y_ref, o_ref):
    # ((x+x) - y) - ((x+x) + (x+x))  ==  -2*x - y   (folded; ~1 ULP vs literal)
    o_ref[...] = x_ref[...] * (-2) - y_ref[...]


def _sublane_multiple(dtype) -> int:
    # (8,128) vreg tiling; sub-32-bit dtypes pack along sublanes.
    itemsize = jnp.dtype(dtype).itemsize
    return {4: 8, 2: 16, 1: 32}.get(itemsize, 8)


def _pick_cols(total: int) -> int:
    # Widest lane-dense column count (multiple of 128, up to 1024) dividing total.
    for c in range(1024, _LANE - 1, -_LANE):
        if total % c == 0:
            return c
    return _LANE


def _pick_tile_rows(rows: int, cols: int, itemsize: int, sub: int) -> int:
    # Target ~4 MiB per operand per pipeline buffer, rounded to sublane multiple.
    target = max(sub, (_TILE_TARGET_BYTES // (cols * itemsize)) // sub * sub)

    if rows <= sub:
        # Single full-extent block (exempt from the (sub,128) divisibility rule).
        return rows

    # tr must be a multiple of `sub` from here on.
    upper = min(target, (rows // sub) * sub)
    if rows >= 2 * sub:
        # Force >= 2 blocks so the "parallel" grid shards across both v7x TCs.
        half = max(sub, (pl.cdiv(rows, 2) // sub) * sub)
        upper = min(upper, half)
    upper = max(sub, upper)

    # Prefer a tr that divides rows: every block stays full -> unmasked vst,
    # no DMA of padded garbage on the last grid step.
    t = upper
    while t >= sub:
        if rows % t == 0:
            return t
        t -= sub
    return upper  # fallback: partial last block, Pallas masks it


def _run_2d(x2d, y2d):
    rows, cols = x2d.shape
    itemsize = jnp.dtype(x2d.dtype).itemsize
    sub = _sublane_multiple(x2d.dtype)
    tr = _pick_tile_rows(rows, cols, itemsize, sub)
    grid = (pl.cdiv(rows, tr),)
    n_elems = rows * cols

    return pl.pallas_call(
        _elementwise_kernel,
        out_shape=jax.ShapeDtypeStruct((rows, cols), x2d.dtype),
        grid=grid,
        in_specs=[
            pl.BlockSpec((tr, cols), lambda i: (i, 0)),
            pl.BlockSpec((tr, cols), lambda i: (i, 0)),
        ],
        out_specs=pl.BlockSpec((tr, cols), lambda i: (i, 0)),
        compiler_params=pltpu.CompilerParams(
            dimension_semantics=("parallel",),
            vmem_limit_bytes=_VMEM_LIMIT_BYTES,
        ),
        cost_estimate=pl.CostEstimate(
            flops=2 * n_elems,
            transcendentals=0,
            bytes_accessed=3 * n_elems * itemsize,
        ),
    )(x2d, y2d)


def test_module_casea(x, y):
    assert x.shape == y.shape and x.dtype == y.dtype
    orig_shape = x.shape
    n = x.size
    if n == 0:
        return x

    x_flat = x.reshape(-1)   # metadata-only reshape (contiguous)
    y_flat = y.reshape(-1)

    bulk = (n // _LANE) * _LANE
    if bulk == n:
        # Common path: lane-aligned size, zero copies around the kernel.
        cols = _pick_cols(n)
        out2d = _run_2d(x_flat.reshape(n // cols, cols),
                        y_flat.reshape(n // cols, cols))
        return out2d.reshape(orig_shape)

    if bulk == 0:
        # Fewer than 128 elements: not worth a kernel launch.
        return (x_flat * (-2) - y_flat).reshape(orig_shape)

    # Ragged case: kernel on the lane-aligned bulk, tiny jnp epilogue for the
    # <128-element tail (avoids padded full copies of both inputs).
    cols = _pick_cols(bulk)
    out_bulk = _run_2d(x_flat[:bulk].reshape(bulk // cols, cols),
                       y_flat[:bulk].reshape(bulk // cols, cols)).reshape(-1)
    out_tail = x_flat[bulk:] * (-2) - y_flat[bulk:]
    return jnp.concatenate([out_bulk, out_tail]).reshape(orig_shape)


if __name__ == "__main__":
    key = jax.random.PRNGKey(0)
    kx, ky = jax.random.split(key)
    # Small NCHW-shaped inputs (module has no parameters; shape is free-form).
    x = jax.random.normal(kx, (2, 4, 16, 16), dtype=jnp.float32)
    y = jax.random.normal(ky, (2, 4, 16, 16), dtype=jnp.float32)

    out = jax.jit(test_module_casea)(x, y)
    jax.block_until_ready(out)

    # Reference: the literal PyTorch op sequence.
    xx = x + x
    ref = (xx - y) - (xx + xx)
    assert out.shape == x.shape and out.dtype == x.dtype
    assert jnp.allclose(out, ref, rtol=1e-6, atol=1e-5), "mismatch vs reference"
    print("KERNEL_OK")
</pallas_src>

<mosaic_0001>
module attributes {stable_mosaic.version = 11 : i64} {
  func.func @_elementwise_kernel(%arg0: i32, %arg1: memref<2x1024xf32, #tpu.memory_space<vmem>>, %arg2: memref<2x1024xf32, #tpu.memory_space<vmem>>, %arg3: memref<2x1024xf32, #tpu.memory_space<vmem>>) attributes {dimension_semantics = [#tpu.dimension_semantics<parallel>], iteration_bounds = array<i64: 1>, scalar_prefetch = 0 : i64, scratch_operands = 0 : i64, tpu.core_type = #tpu.core_type<tc>, window_params = [{transform_indices = @transform_0, window_bounds = array<i64: 2, 1024>}, {transform_indices = @transform_1, window_bounds = array<i64: 2, 1024>}, {transform_indices = @transform_2, window_bounds = array<i64: 2, 1024>}]} {
    %c0 = arith.constant 0 : index
    %c0_0 = arith.constant 0 : index
    %0 = vector.load %arg1[%c0, %c0_0] : memref<2x1024xf32, #tpu.memory_space<vmem>>, vector<2x1024xf32>
    %cst = arith.constant -2.000000e+00 : f32
    %1 = vector.broadcast %cst : f32 to vector<2x1024xf32>
    %2 = arith.mulf %0, %1 : vector<2x1024xf32>
    %c0_1 = arith.constant 0 : index
    %c0_2 = arith.constant 0 : index
    %3 = vector.load %arg2[%c0_1, %c0_2] : memref<2x1024xf32, #tpu.memory_space<vmem>>, vector<2x1024xf32>
    %4 = arith.subf %2, %3 : vector<2x1024xf32>
    %c0_3 = arith.constant 0 : index
    %c0_4 = arith.constant 0 : index
    %5 = vector.load %arg3[%c0_3, %c0_4] : memref<2x1024xf32, #tpu.memory_space<vmem>>, vector<2x1024xf32>
    tpu.vector_store %arg3[%c0_3, %c0_4], %4 {strides = array<i32>} : memref<2x1024xf32, #tpu.memory_space<vmem>>, vector<2x1024xf32>,
    return
  }
  func.func @transform_0(%arg0: i32) -> (i32, i32) {
    %c0_i32 = arith.constant 0 : i32
    %c0_i32_0 = arith.constant 0 : i32
    return %arg0, %c0_i32 : i32, i32
  }
  func.func @transform_1(%arg0: i32) -> (i32, i32) {
    %c0_i32 = arith.constant 0 : i32
    %c0_i32_0 = arith.constant 0 : i32
    return %arg0, %c0_i32 : i32, i32
  }
  func.func @transform_2(%arg0: i32) -> (i32, i32) {
    %c0_i32 = arith.constant 0 : i32
    %c0_i32_0 = arith.constant 0 : i32
    return %arg0, %c0_i32 : i32, i32
  }
}

</mosaic_0001>

<bundles_post_ra>
// kernel: test_module_casea.1
= control target key start
LH: loop header
LB: loop body
LE: loop exit
PB: predicated region body
PF: predicated region fallthrough
CT: control target
= control target key end

     0   :  { %s58_s0 = inlined_call_operand.vmem [shape: f32[2,1024], index: 0, kind: input, shape index: {}]   ;;  %s59_s1 = inlined_call_operand.vmem [shape: f32[2,1024], index: 1, kind: input, shape index: {}]   ;;  %s60_s2 = inlined_call_operand.vmem [shape: f32[2,1024], index: 2, kind: output, shape index: {}]  }
   0x1   :  { %v11_v0 = vld [vmem:[%s58_s0] sm:$0xff]  ;;  %v12_v2 = vld [vmem:[%s58_s0 + $0x8] sm:$0xff] }
   0x2   :  { %v15_v1 = vld [vmem:[%s59_s1] sm:$0xff]  ;;  %v13_v3 = vmul.f32 -2.0, %v11_v0  ;;  %v14_v4 = vmul.f32 -2.0, %v12_v2  ;;  %v16_v5 = vld [vmem:[%s59_s1 + $0x8] sm:$0xff] }
   0x4   :  { %v17_v6 = vsub.f32 %v13_v3, %v15_v1  ;;  %v18_v7 = vsub.f32 %v14_v4, %v16_v5 }
   0x6   :  { %19 = vst [vmem:[%s60_s2] sm:$0xff] %v17_v6  ;;  %20 = vst [vmem:[%s60_s2 + $0x8] sm:$0xff] %v18_v7 }

</bundles_post_ra>
